<compile_context>
chip_gen: v7x
topology: tpu7x:2x2x1
jax: 0.10.0
libtpu: 0.0.40
codegen_flags: <defaults>
</compile_context>

<pallas_src>
import numpy as np
import jax
import jax.numpy as jnp
from jax import lax
from jax.experimental import pallas as pl
from jax.experimental.pallas import tpu as pltpu

IN_CHANNELS = 8
ADD_TO_EDGE_SCORE = 0.5
_NEG = -1e30


def _round_up(v, m):
    return ((v + m - 1) // m) * m


def _dot_tn(a, b):
    # contract axis 0 of both operands: a (N, p), b (N, q) -> (p, q), no `.T` relayout
    return lax.dot_general(a, b, (((0,), (0,)), ((), ())),
                           preferred_element_type=jnp.float32)


def _dot_nt(a, b):
    # contract axis 1 of both operands: a (p, E), b (q, E) -> (p, q), no `.T` relayout
    return lax.dot_general(a, b, (((1,), (1,)), ((), ())),
                           preferred_element_type=jnp.float32)


# ---------------- Kernel 1: fused edge Linear + per-dst softmax -----------------
def _edge_score_softmax_kernel(src_ref, dst_ref, x_ref, w_ref, b_ref,
                               o_ref, m_s, l_s):
    """grid = (2, nT).  Phase 0: online (max, sum) per destination node over E
    tiles.  Phase 1: emit normalized scores per E tile (lane-dense (1, tE))."""
    phase = pl.program_id(0)

    @pl.when(jnp.logical_and(phase == 0, pl.program_id(1) == 0))
    def _init():
        m_s[...] = jnp.full_like(m_s, _NEG)
        l_s[...] = jnp.zeros_like(l_s)

    x = x_ref[...]                                          # (Np, C)
    n_pad = x.shape[0]
    t_e = src_ref.shape[1]
    # per-node partial scores: ns[:,0] = x.w_src, ns[:,1] = x.w_dst
    ns = jnp.dot(x, w_ref[...], preferred_element_type=jnp.float32)   # (Np, 2)

    node_iota = lax.broadcasted_iota(jnp.int32, (n_pad, t_e), 0)
    soh = (node_iota == src_ref[...]).astype(jnp.float32)   # (Np, tE) src one-hot
    doh = (node_iota == dst_ref[...]).astype(jnp.float32)   # (Np, tE) dst one-hot

    # raw[e] = w_src.x[src[e]] + w_dst.x[dst[e]] + b          (1, tE)
    raw = _dot_tn(ns[:, 0:1], soh) + _dot_tn(ns[:, 1:2], doh) + b_ref[0]

    @pl.when(phase == 0)
    def _accumulate():
        masked = jnp.where(doh > 0.5, raw, _NEG)                       # (Np, tE)
        m_new = jnp.maximum(m_s[...], jnp.max(masked, axis=1, keepdims=True))
        g_max = _dot_tn(m_new, doh)                                    # m_new[dst[e]]
        tile_sum = _dot_nt(doh, jnp.exp(raw - g_max))                  # (Np, 1)
        l_s[...] = jnp.exp(m_s[...] - m_new) * l_s[...] + tile_sum
        m_s[...] = m_new

    @pl.when(phase == 1)
    def _finalize():
        g_max = _dot_tn(m_s[...], doh)                                 # (1, tE)
        g_sum = _dot_tn(l_s[...], doh)                                 # (1, tE)
        o_ref[...] = jnp.exp(raw - g_max) / (g_sum + 1e-16) + ADD_TO_EDGE_SCORE


def edge_score_softmax(src, dst, x, w2, b, *, tile_e, n_tiles):
    n_pad, c = x.shape
    e_pad = src.shape[1]
    return pl.pallas_call(
        _edge_score_softmax_kernel,
        grid=(2, n_tiles),
        in_specs=[
            pl.BlockSpec((1, tile_e), lambda p, t: (0, t)),
            pl.BlockSpec((1, tile_e), lambda p, t: (0, t)),
            pl.BlockSpec((n_pad, c), lambda p, t: (0, 0)),
            pl.BlockSpec((c, 2), lambda p, t: (0, 0)),
            pl.BlockSpec(memory_space=pltpu.MemorySpace.SMEM),   # bias scalar
        ],
        out_specs=pl.BlockSpec((1, tile_e), lambda p, t: (0, t)),
        out_shape=jax.ShapeDtypeStruct((1, e_pad), jnp.float32),
        scratch_shapes=[pltpu.VMEM((n_pad, 1), jnp.float32),     # running max per node
                        pltpu.VMEM((n_pad, 1), jnp.float32)],    # running sum per node
        compiler_params=pltpu.CompilerParams(
            dimension_semantics=("arbitrary", "arbitrary")),
    )(src, dst, x, w2, b)


# ---------------- Kernel 2: merge selected edges + cluster scatter-add ----------
def _cluster_pool_kernel(src_ref, dst_ref, sel_ref, esc_ref, cl_ref, x_ref,
                         o_ref, add_s, deg_s):
    """grid = (nT,).  Accumulate the per-node edge sums and degrees over E tiles;
    on the last tile build the (K, N) cluster one-hot and emit pooled features."""
    t = pl.program_id(0)

    @pl.when(t == 0)
    def _init():
        add_s[...] = jnp.zeros_like(add_s)
        deg_s[...] = jnp.zeros_like(deg_s)

    x = x_ref[...]                                          # (Np, C)
    n_pad = x.shape[0]
    t_e = src_ref.shape[1]

    node_iota = lax.broadcasted_iota(jnp.int32, (n_pad, t_e), 0)
    soh = (node_iota == src_ref[...]).astype(jnp.float32)
    doh = (node_iota == dst_ref[...]).astype(jnp.float32)
    inc = (soh + doh) * sel_ref[...]                        # masked incidence (Np, tE)

    # per-edge x[src]+x[dst] for selected edges: single TN matmul (no transpose)
    pair_sum = _dot_tn(inc, x)                              # (tE, C)
    inc_s = inc * esc_ref[...]                              # fold edge score into inc
    add_s[...] += jnp.dot(inc_s, pair_sum, preferred_element_type=jnp.float32)
    deg_s[...] += jnp.dot(inc, jnp.ones((t_e, 1), jnp.float32),
                          preferred_element_type=jnp.float32)

    @pl.when(t == pl.num_programs(0) - 1)
    def _finalize():
        deg = deg_s[...]                                    # (Np, 1)
        new_x = jnp.where(deg > 0.5, add_s[...] / jnp.maximum(deg, 1.0), x)
        k_pad = o_ref.shape[0]
        k_iota = lax.broadcasted_iota(jnp.int32, (k_pad, n_pad), 0)
        coh = (k_iota == cl_ref[...]).astype(jnp.float32)   # (Kp, Np) cluster one-hot
        o_ref[...] = jnp.dot(coh, new_x, preferred_element_type=jnp.float32)


def cluster_pool(src, dst, sel, esc, clu, x, *, k_pad, tile_e, n_tiles):
    n_pad, c = x.shape
    return pl.pallas_call(
        _cluster_pool_kernel,
        grid=(n_tiles,),
        in_specs=[
            pl.BlockSpec((1, tile_e), lambda t: (0, t)),
            pl.BlockSpec((1, tile_e), lambda t: (0, t)),
            pl.BlockSpec((1, tile_e), lambda t: (0, t)),
            pl.BlockSpec((1, tile_e), lambda t: (0, t)),
            pl.BlockSpec((1, n_pad), lambda t: (0, 0)),
            pl.BlockSpec((n_pad, c), lambda t: (0, 0)),
        ],
        out_specs=pl.BlockSpec((k_pad, c), lambda t: (0, 0)),
        out_shape=jax.ShapeDtypeStruct((k_pad, c), jnp.float32),
        scratch_shapes=[pltpu.VMEM((n_pad, c), jnp.float32),   # index_add accumulator
                        pltpu.VMEM((n_pad, 1), jnp.float32)],  # degree (bincount)
        compiler_params=pltpu.CompilerParams(
            dimension_semantics=("arbitrary",)),
    )(src, dst, sel, esc, clu, x)


# ---------------- Host-side glue (sequential graph algorithm) -------------------
def calculate_components_np(n_nodes, edges):
    adj = {i: set() for i in range(n_nodes)}
    for a, b in edges.T.tolist():
        adj[a].add(b)
        adj[b].add(a)
    seen = set()
    comps = []
    for node in range(n_nodes):
        if node in seen:
            continue
        stack = [node]
        seen.add(node)
        comp = []
        while stack:
            u = stack.pop()
            comp.append(u)
            for v in adj[u]:
                if v not in seen:
                    seen.add(v)
                    stack.append(v)
        comps.append(comp)
    return comps


def cluster_pooling_forward(x, edge_index, batch, w, b):
    """Mirror of ClusterPooling.forward (eval mode, dropout=0, softmax scores)."""
    x = jnp.asarray(x, jnp.float32)
    edge_index = np.asarray(edge_index)
    batch = np.asarray(batch)
    n, c = x.shape

    # remove self loops (data-dependent shape -> host glue)
    keep = edge_index[0] != edge_index[1]
    edge_index = edge_index[:, keep]
    e_cnt = edge_index.shape[1]

    # padding: E -> lane multiples (tileable), N -> sublane multiple
    n_pad = _round_up(n, 8)
    if e_cnt <= 512:
        e_pad = _round_up(max(e_cnt, 1), 128)
        tile_e = e_pad
    else:
        e_pad = _round_up(e_cnt, 512)
        tile_e = 512
    n_tiles = e_pad // tile_e

    x_pad = jnp.zeros((n_pad, c), jnp.float32).at[:n, :].set(x)
    src_np = np.full((1, e_pad), n_pad, np.int32)   # sentinel -> all-zero one-hot col
    dst_np = np.full((1, e_pad), n_pad, np.int32)
    src_np[0, :e_cnt] = edge_index[0]
    dst_np[0, :e_cnt] = edge_index[1]
    src_d = jnp.asarray(src_np)
    dst_d = jnp.asarray(dst_np)

    # Linear(2C, 1) weight, split into (C, 2) = [w_src | w_dst]; bias as SMEM scalar
    w = jnp.asarray(w, jnp.float32).reshape(2 * c, 1)
    w2 = jnp.concatenate([w[:c], w[c:]], axis=1)
    b_arr = jnp.asarray(b, jnp.float32).reshape((1,))

    # kernel 1: fused edge Linear + per-dst softmax (+ add_to_edge_score)
    e_scores = edge_score_softmax(src_d, dst_d, x_pad, w2, b_arr,
                                  tile_e=tile_e, n_tiles=n_tiles)
    e_np = np.asarray(e_scores)[0, :e_cnt]          # host sync (needed for selection)

    # edge selection threshold (quantile / median, as in torch)
    if e_cnt > n:
        q = 1.0 - int(n / 2) / e_cnt
        edge_mask_np = e_np > np.quantile(e_np, q)
    else:
        med = np.sort(e_np)[(e_cnt - 1) // 2]       # torch.median = lower middle elem
        edge_mask_np = e_np >= med

    # connected components on the selected-edge subgraph
    # TODO(synk): connected components are inherently sequential graph traversal;
    # no clean Pallas equivalent, kept on host (this forces the device->host sync).
    sel_idx = np.nonzero(edge_mask_np)[0]
    new_edge = edge_index[:, sel_idx]
    comps = calculate_components_np(n, new_edge)
    cluster = np.empty(n, dtype=np.int64)
    for i, comp in enumerate(comps):
        cluster[comp] = i
    k = len(comps)
    k_pad = _round_up(k, 8)

    sel_np = np.zeros((1, e_pad), np.float32)
    sel_np[0, :e_cnt] = edge_mask_np
    esc_np = np.zeros((1, e_pad), np.float32)
    esc_np[0, :e_cnt] = e_np
    cl_np = np.full((1, n_pad), k_pad, np.int32)    # sentinel for padded nodes
    cl_np[0, :n] = cluster

    # kernel 2: merge selected edges + per-cluster scatter-add
    pooled = cluster_pool(src_d, dst_d, jnp.asarray(sel_np), jnp.asarray(esc_np),
                          jnp.asarray(cl_np), x_pad,
                          k_pad=k_pad, tile_e=tile_e, n_tiles=n_tiles)
    new_x = pooled[:k]

    # coarsened edge_index (coalesce) and batch vector (host glue)
    mapped = cluster[edge_index]
    pairs = sorted(set(map(tuple, mapped.T.tolist())))
    new_edge_index = (np.array(pairs, dtype=np.int64).T
                      if pairs else np.zeros((2, 0), np.int64))
    new_batch = np.empty(k, dtype=np.int64)
    new_batch[cluster] = batch

    unpool_info = dict(cluster=cluster, edge_mask=edge_mask_np,
                       new_edge_score=e_np[sel_idx], cluster_map=comps,
                       edge_index_kept=edge_index, edge_score_all=e_np)
    return new_x, new_edge_index, new_batch, unpool_info


# ---------------- NumPy references for the numerical self-check ----------------
def _reference_scores(x, src, dst, w, b, n):
    x = np.asarray(x, np.float64)
    w = np.asarray(w, np.float64).reshape(-1)
    b = float(np.asarray(b).reshape(-1)[0])
    c = x.shape[1]
    raw = x[src] @ w[:c] + x[dst] @ w[c:] + b
    out = np.zeros_like(raw)
    for node in range(n):
        m = dst == node
        if np.any(m):
            r = raw[m]
            ex = np.exp(r - r.max())
            out[m] = ex / (ex.sum() + 1e-16)
    return out + ADD_TO_EDGE_SCORE


def _reference_merge(x, src, dst, mask, score, cluster, k):
    x = np.asarray(x, np.float64)
    sel = np.nonzero(mask)[0]
    s, d = src[sel], dst[sel]
    sc = np.asarray(score, np.float64)[sel]
    reps = (x[s] + x[d]) * sc[:, None]
    new_x = x.copy()
    deg = np.bincount(np.concatenate([s, d]), minlength=x.shape[0])
    new_x[deg > 0] = 0.0
    np.add.at(new_x, s, reps)
    np.add.at(new_x, d, reps)
    nz = deg > 0
    new_x[nz] = new_x[nz] / deg[nz][:, None]
    out = np.zeros((k, x.shape[1]))
    np.add.at(out, cluster, new_x)
    return out


if __name__ == "__main__":
    key = jax.random.PRNGKey(0)
    k_w, k_b, k_x = jax.random.split(key, 3)

    # deterministic parameters for torch.nn.Linear(2*C, 1)
    bound = 1.0 / np.sqrt(2 * IN_CHANNELS)
    w = jax.random.uniform(k_w, (2 * IN_CHANNELS, 1), jnp.float32, -bound, bound)
    b = jax.random.uniform(k_b, (1,), jnp.float32, -bound, bound)

    # small graph: 10 nodes (two graphs of 5), 15 directed edges incl. one self loop
    n_nodes = 10
    x = jax.random.normal(k_x, (n_nodes, IN_CHANNELS), jnp.float32)
    edge_index = np.array(
        [[0, 1, 1, 2, 2, 3, 4, 2, 5, 6, 6, 7, 8, 9, 5],
         [1, 0, 2, 1, 3, 4, 0, 2, 6, 5, 7, 8, 9, 5, 7]], dtype=np.int64)
    batch = np.array([0] * 5 + [1] * 5, dtype=np.int64)

    new_x, new_edge_index, new_batch, info = cluster_pooling_forward(
        x, edge_index, batch, w, b)
    jax.block_until_ready(new_x)

    assert new_x.shape[1] == IN_CHANNELS
    assert new_x.shape[0] == len(info["cluster_map"])
    assert new_batch.shape[0] == new_x.shape[0]

    # numerical self-check of both kernels against NumPy (same mask/cluster)
    ei = info["edge_index_kept"]
    ref_scores = _reference_scores(np.asarray(x), ei[0], ei[1],
                                   np.asarray(w), np.asarray(b), n_nodes)
    assert np.allclose(info["edge_score_all"], ref_scores, atol=1e-4)
    ref_pool = _reference_merge(np.asarray(x), ei[0], ei[1], info["edge_mask"],
                                info["edge_score_all"], info["cluster"],
                                new_x.shape[0])
    assert np.allclose(np.asarray(new_x), ref_pool, atol=1e-3)

    print("KERNEL_OK")
</pallas_src>

<mosaic_0001>
module attributes {stable_mosaic.version = 11 : i64} {
  func.func @_edge_score_softmax_kernel(%arg0: i32, %arg1: i32, %arg2: memref<1x128xi32, #tpu.memory_space<vmem>>, %arg3: memref<1x128xi32, #tpu.memory_space<vmem>>, %arg4: memref<16x8xf32, #tpu.memory_space<vmem>>, %arg5: memref<8x2xf32, #tpu.memory_space<vmem>>, %arg6: memref<1xf32, #tpu.memory_space<smem>>, %arg7: memref<1x128xf32, #tpu.memory_space<vmem>>, %arg8: memref<16x1xf32, #tpu.memory_space<vmem>>, %arg9: memref<16x1xf32, #tpu.memory_space<vmem>>) attributes {dimension_semantics = [#tpu.dimension_semantics<arbitrary>, #tpu.dimension_semantics<arbitrary>], iteration_bounds = array<i64: 2, 1>, scalar_prefetch = 0 : i64, scratch_operands = 2 : i64, tpu.core_type = #tpu.core_type<tc>, window_params = [{transform_indices = @transform_0, window_bounds = array<i64: 1, 128>}, {transform_indices = @transform_1, window_bounds = array<i64: 1, 128>}, {pipeline_mode = #tpu.pipeline_mode<synchronous>, transform_indices = @transform_2, window_bounds = array<i64: 16, 8>}, {pipeline_mode = #tpu.pipeline_mode<synchronous>, transform_indices = @transform_3, window_bounds = array<i64: 8, 2>}, {transform_indices = @transform_4, window_bounds = array<i64: 1>}, {transform_indices = @transform_5, window_bounds = array<i64: 1, 128>}]} {
    %c0_i32 = arith.constant 0 : i32
    %0 = arith.cmpi eq, %arg0, %c0_i32 : i32
    %c0_i32_0 = arith.constant 0 : i32
    %1 = arith.cmpi eq, %arg1, %c0_i32_0 : i32
    %2 = arith.andi %0, %1 : i1
    %3 = arith.extui %2 : i1 to i32
    %c0_i32_1 = arith.constant 0 : i32
    %4 = arith.cmpi ne, %3, %c0_i32_1 : i32
    scf.if %4 {
      %cst_15 = arith.constant -1.000000e+30 : f32
      %33 = vector.broadcast %cst_15 : f32 to vector<16x1xf32>
      %c0_16 = arith.constant 0 : index
      %c0_17 = arith.constant 0 : index
      %34 = vector.load %arg8[%c0_16, %c0_17] : memref<16x1xf32, #tpu.memory_space<vmem>>, vector<16x1xf32>
      tpu.vector_store %arg8[%c0_16, %c0_17], %33 {strides = array<i32>} : memref<16x1xf32, #tpu.memory_space<vmem>>, vector<16x1xf32>,
      %cst_18 = arith.constant 0.000000e+00 : f32
      %35 = vector.broadcast %cst_18 : f32 to vector<16x1xf32>
      %c0_19 = arith.constant 0 : index
      %c0_20 = arith.constant 0 : index
      %36 = vector.load %arg9[%c0_19, %c0_20] : memref<16x1xf32, #tpu.memory_space<vmem>>, vector<16x1xf32>
      tpu.vector_store %arg9[%c0_19, %c0_20], %35 {strides = array<i32>} : memref<16x1xf32, #tpu.memory_space<vmem>>, vector<16x1xf32>,
    } else {
    }
    %c0 = arith.constant 0 : index
    %c0_2 = arith.constant 0 : index
    %5 = vector.load %arg4[%c0, %c0_2] : memref<16x8xf32, #tpu.memory_space<vmem>>, vector<16x8xf32>
    %c0_3 = arith.constant 0 : index
    %c0_4 = arith.constant 0 : index
    %6 = vector.load %arg5[%c0_3, %c0_4] : memref<8x2xf32, #tpu.memory_space<vmem>>, vector<8x2xf32>
    %cst = arith.constant dense<0.000000e+00> : vector<16x2xf32>
    %7 = tpu.matmul %5, %6, %cst {dimension_numbers = #tpu.dot_dimension_numbers<[1], [0], [0], [1], [0, 0, 1, 1], [], []>} : vector<16x8xf32>, vector<8x2xf32>, vector<16x2xf32> -> vector<16x2xf32>
    %8 = tpu.iota {dimensions = array<i32: 0>} : vector<16x128xi32>
    %c0_5 = arith.constant 0 : index
    %c0_6 = arith.constant 0 : index
    %9 = vector.load %arg2[%c0_5, %c0_6] : memref<1x128xi32, #tpu.memory_space<vmem>>, vector<1x128xi32>
    %10 = vector.broadcast %9 : vector<1x128xi32> to vector<16x128xi32>
    %11 = arith.cmpi eq, %8, %10 : vector<16x128xi32>
    %12 = arith.extui %11 : vector<16x128xi1> to vector<16x128xi32>
    %13 = arith.sitofp %12 : vector<16x128xi32> to vector<16x128xf32>
    %c0_7 = arith.constant 0 : index
    %c0_8 = arith.constant 0 : index
    %14 = vector.load %arg3[%c0_7, %c0_8] : memref<1x128xi32, #tpu.memory_space<vmem>>, vector<1x128xi32>
    %15 = vector.broadcast %14 : vector<1x128xi32> to vector<16x128xi32>
    %16 = arith.cmpi eq, %8, %15 : vector<16x128xi32>
    %17 = arith.extui %16 : vector<16x128xi1> to vector<16x128xi32>
    %18 = arith.sitofp %17 : vector<16x128xi32> to vector<16x128xf32>
    %19 = vector.extract_strided_slice %7 {offsets = [0, 0], sizes = [16, 1], strides = [1, 1]} : vector<16x2xf32> to vector<16x1xf32>
    %cst_9 = arith.constant dense<0.000000e+00> : vector<1x128xf32>
    %20 = tpu.matmul %19, %13, %cst_9 {dimension_numbers = #tpu.dot_dimension_numbers<[0], [0], [1], [1], [0, 1, 1, 1], [], []>} : vector<16x1xf32>, vector<16x128xf32>, vector<1x128xf32> -> vector<1x128xf32>
    %21 = vector.extract_strided_slice %7 {offsets = [0, 1], sizes = [16, 1], strides = [1, 1]} : vector<16x2xf32> to vector<16x1xf32>
    %cst_10 = arith.constant dense<0.000000e+00> : vector<1x128xf32>
    %22 = tpu.matmul %21, %18, %cst_10 {dimension_numbers = #tpu.dot_dimension_numbers<[0], [0], [1], [1], [0, 1, 1, 1], [], []>} : vector<16x1xf32>, vector<16x128xf32>, vector<1x128xf32> -> vector<1x128xf32>
    %23 = arith.addf %20, %22 : vector<1x128xf32>
    %c0_11 = arith.constant 0 : index
    %24 = memref.load %arg6[%c0_11] : memref<1xf32, #tpu.memory_space<smem>>
    %25 = vector.broadcast %24 : f32 to vector<1x128xf32>
    %26 = arith.addf %23, %25 : vector<1x128xf32>
    %c0_i32_12 = arith.constant 0 : i32
    %27 = arith.cmpi eq, %arg0, %c0_i32_12 : i32
    %28 = arith.extui %27 : i1 to i32
    %c0_i32_13 = arith.constant 0 : i32
    %29 = arith.cmpi ne, %28, %c0_i32_13 : i32
    scf.if %29 {
      %cst_15 = arith.constant 5.000000e-01 : f32
      %33 = vector.broadcast %cst_15 : f32 to vector<16x128xf32>
      %34 = arith.cmpf ogt, %18, %33 : vector<16x128xf32>
      %cst_16 = arith.constant -1.000000e+30 : f32
      %35 = vector.shape_cast %26 : vector<1x128xf32> to vector<1x128xf32>
      %36 = vector.broadcast %35 : vector<1x128xf32> to vector<16x128xf32>
      %37 = vector.broadcast %cst_16 : f32 to vector<16x128xf32>
      %38 = arith.select %34, %36, %37 : vector<16x128xi1>, vector<16x128xf32>
      %c0_17 = arith.constant 0 : index
      %c0_18 = arith.constant 0 : index
      %39 = vector.load %arg8[%c0_17, %c0_18] : memref<16x1xf32, #tpu.memory_space<vmem>>, vector<16x1xf32>
      %cst_19 = arith.constant dense<0xFF800000> : vector<16xf32>
      %40 = vector.multi_reduction <maximumf>, %38, %cst_19 [1] : vector<16x128xf32> to vector<16xf32>
      %41 = vector.shape_cast %40 : vector<16xf32> to vector<16x1xf32>
      %42 = arith.maximumf %39, %41 : vector<16x1xf32>
      %cst_20 = arith.constant dense<0.000000e+00> : vector<1x128xf32>
      %43 = tpu.matmul %42, %18, %cst_20 {dimension_numbers = #tpu.dot_dimension_numbers<[0], [0], [1], [1], [0, 1, 1, 1], [], []>} : vector<16x1xf32>, vector<16x128xf32>, vector<1x128xf32> -> vector<1x128xf32>
      %44 = arith.subf %26, %43 : vector<1x128xf32>
      %45 = math.exp %44 : vector<1x128xf32>
      %cst_21 = arith.constant dense<0.000000e+00> : vector<16x1xf32>
      %46 = tpu.matmul %18, %45, %cst_21 {dimension_numbers = #tpu.dot_dimension_numbers<[1], [1], [0], [0], [0, 0, 1, 0], [], []>} : vector<16x128xf32>, vector<1x128xf32>, vector<16x1xf32> -> vector<16x1xf32>
      %c0_22 = arith.constant 0 : index
      %c0_23 = arith.constant 0 : index
      %47 = vector.load %arg8[%c0_22, %c0_23] : memref<16x1xf32, #tpu.memory_space<vmem>>, vector<16x1xf32>
      %48 = arith.subf %47, %42 : vector<16x1xf32>
      %49 = math.exp %48 : vector<16x1xf32>
      %c0_24 = arith.constant 0 : index
      %c0_25 = arith.constant 0 : index
      %50 = vector.load %arg9[%c0_24, %c0_25] : memref<16x1xf32, #tpu.memory_space<vmem>>, vector<16x1xf32>
      %51 = arith.mulf %49, %50 : vector<16x1xf32>
      %52 = arith.addf %51, %46 : vector<16x1xf32>
      %c0_26 = arith.constant 0 : index
      %c0_27 = arith.constant 0 : index
      %53 = vector.load %arg9[%c0_26, %c0_27] : memref<16x1xf32, #tpu.memory_space<vmem>>, vector<16x1xf32>
      tpu.vector_store %arg9[%c0_26, %c0_27], %52 {strides = array<i32>} : memref<16x1xf32, #tpu.memory_space<vmem>>, vector<16x1xf32>,
      %c0_28 = arith.constant 0 : index
      %c0_29 = arith.constant 0 : index
      %54 = vector.load %arg8[%c0_28, %c0_29] : memref<16x1xf32, #tpu.memory_space<vmem>>, vector<16x1xf32>
      tpu.vector_store %arg8[%c0_28, %c0_29], %42 {strides = array<i32>} : memref<16x1xf32, #tpu.memory_space<vmem>>, vector<16x1xf32>,
    } else {
    }
    %c1_i32 = arith.constant 1 : i32
    %30 = arith.cmpi eq, %arg0, %c1_i32 : i32
    %31 = arith.extui %30 : i1 to i32
    %c0_i32_14 = arith.constant 0 : i32
    %32 = arith.cmpi ne, %31, %c0_i32_14 : i32
    scf.if %32 {
      %c0_15 = arith.constant 0 : index
      %c0_16 = arith.constant 0 : index
      %33 = vector.load %arg8[%c0_15, %c0_16] : memref<16x1xf32, #tpu.memory_space<vmem>>, vector<16x1xf32>
      %cst_17 = arith.constant dense<0.000000e+00> : vector<1x128xf32>
      %34 = tpu.matmul %33, %18, %cst_17 {dimension_numbers = #tpu.dot_dimension_numbers<[0], [0], [1], [1], [0, 1, 1, 1], [], []>} : vector<16x1xf32>, vector<16x128xf32>, vector<1x128xf32> -> vector<1x128xf32>
      %c0_18 = arith.constant 0 : index
      %c0_19 = arith.constant 0 : index
      %35 = vector.load %arg9[%c0_18, %c0_19] : memref<16x1xf32, #tpu.memory_space<vmem>>, vector<16x1xf32>
      %cst_20 = arith.constant dense<0.000000e+00> : vector<1x128xf32>
      %36 = tpu.matmul %35, %18, %cst_20 {dimension_numbers = #tpu.dot_dimension_numbers<[0], [0], [1], [1], [0, 1, 1, 1], [], []>} : vector<16x1xf32>, vector<16x128xf32>, vector<1x128xf32> -> vector<1x128xf32>
      %37 = arith.subf %26, %34 : vector<1x128xf32>
      %38 = math.exp %37 : vector<1x128xf32>
      %cst_21 = arith.constant 1.000000e-16 : f32
      %39 = vector.broadcast %cst_21 : f32 to vector<1x128xf32>
      %40 = arith.addf %36, %39 : vector<1x128xf32>
      %41 = arith.divf %38, %40 : vector<1x128xf32>
      %cst_22 = arith.constant 5.000000e-01 : f32
      %42 = vector.broadcast %cst_22 : f32 to vector<1x128xf32>
      %43 = arith.addf %41, %42 : vector<1x128xf32>
      %c0_23 = arith.constant 0 : index
      %c0_24 = arith.constant 0 : index
      %44 = vector.load %arg7[%c0_23, %c0_24] : memref<1x128xf32, #tpu.memory_space<vmem>>, vector<1x128xf32>
      tpu.vector_store %arg7[%c0_23, %c0_24], %43 {strides = array<i32>} : memref<1x128xf32, #tpu.memory_space<vmem>>, vector<1x128xf32>,
    } else {
    }
    return
  }
  func.func @transform_0(%arg0: i32, %arg1: i32) -> (i32, i32) {
    %c0_i32 = arith.constant 0 : i32
    %c0_i32_0 = arith.constant 0 : i32
    return %c0_i32, %arg1 : i32, i32
  }
  func.func @transform_1(%arg0: i32, %arg1: i32) -> (i32, i32) {
    %c0_i32 = arith.constant 0 : i32
    %c0_i32_0 = arith.constant 0 : i32
    return %c0_i32, %arg1 : i32, i32
  }
  func.func @transform_2(%arg0: i32, %arg1: i32) -> (i32, i32) {
    %c0_i32 = arith.constant 0 : i32
    %c0_i32_0 = arith.constant 0 : i32
    %c0_i32_1 = arith.constant 0 : i32
    return %c0_i32, %c0_i32_0 : i32, i32
  }
  func.func @transform_3(%arg0: i32, %arg1: i32) -> (i32, i32) {
    %c0_i32 = arith.constant 0 : i32
    %c0_i32_0 = arith.constant 0 : i32
    %c0_i32_1 = arith.constant 0 : i32
    return %c0_i32, %c0_i32_0 : i32, i32
  }
  func.func @transform_4(%arg0: i32, %arg1: i32) -> i32 {
    %c0_i32 = arith.constant 0 : i32
    %c0_i32_0 = arith.constant 0 : i32
    return %c0_i32 : i32
  }
  func.func @transform_5(%arg0: i32, %arg1: i32) -> (i32, i32) {
    %c0_i32 = arith.constant 0 : i32
    %c0_i32_0 = arith.constant 0 : i32
    return %c0_i32, %arg1 : i32, i32
  }
}

</mosaic_0001>

<bundles_post_ra>
// kernel: tpu_custom_call.1
= control target key start
LH: loop header
LB: loop body
LE: loop exit
PB: predicated region body
PF: predicated region fallthrough
CT: control target
= control target key end

     0   :  { %s1414_s0 = inlined_call_operand.vmem [shape: s32[1,128], index: 0, kind: input, shape index: {}]   ;;  %s1415_s1 = inlined_call_operand.vmem [shape: s32[1,128], index: 1, kind: input, shape index: {}]   ;;  %s1416_s2 = inlined_call_operand.vmem [shape: f32[16,8], index: 2, kind: input, shape index: {}]   ;;  %s1417_s3 = inlined_call_operand.vmem [shape: f32[8,2], index: 3, kind: input, shape index: {}]   ;;  %s1418_s4 = inlined_call_operand.<no memory space> [shape: f32[1], index: 4, kind: input, shape index: {}]   ;;  %s1419_s5 = inlined_call_operand.hbm [shape: f32[1,128], index: 5, kind: output, shape index: {}]  }
   0x1   :  { %10 = sst [smem:[#allocation4]] %s1418_s4 }
   0x2   :  { %11 = vsyncpa [#allocation6], 0  ;;  %s1298_s20 = smov 0   ;;  %s1300_s21 = smov 0  }
   0x3   :  { %s1302_s22 = smov 0  }
   0x4 LB: > { %s1030_s4 = sadd.s32 4294967295, %s1247_s22   ;;  %s29_s23 = sadd.s32 1, %s1243_s21  ;;  %s1247_s22 = sphi %s1302_s22, %s17_s22   ;;  %s1243_s21 = sphi %s1300_s21, %s1424_s21   ;;  %s1239_s20 = sphi %s1298_s20, %s1423_s20  }
   0x5   : > { %p31_p0 = scmp.ge.s32.totalorder %s29_s23, 2  ;;  %p1034_p1 = scmp.ge.s32.totalorder %s1247_s22, 1 }
   0x6   : > { %p207_p2 = scmp.lt.s32.totalorder %s1247_s22, 3 }
   0x7   : > { %s1426_s23 = smov (%p31_p0, %s29_s23), 0 }
   0x8   : > { %p208_p3 = pnand %p1034_p1, %p207_p2 }
   0x9   : > { %p237_p4 = scmp.eq.s32.totalorder (!%p208_p3), %s1239_s20, 0 }
   0xa   : > { %211 = sbr.rel (%p208_p3) target bundleno = 1744 (0x6d0), region = 40 }
  0x11   : > { %242 = sbr.rel (!%p237_p4) target bundleno = 24 (0x18), region = 44  ;;  %vm243_vm0 = vcmask (%p237_p4), 7168   ;;  %v1249_v0 = vmov (%p237_p4), -1e+30   ;;  %v1250_v1 = vmov (%p237_p4), 0.0  }
  0x12   : > { %244 = vst.msk [vmem:[#allocation2] sm:$0xff] (%p237_p4), %vm243_vm0, %v1249_v0  ;;  %245 = vst.msk [vmem:[#allocation2 + $0x8] sm:$0xff] (%p237_p4), %vm243_vm0, %v1249_v0 }
  0x13   : > { %246 = vst.msk [vmem:[#allocation3] sm:$0xff] (%p237_p4), %vm243_vm0, %v1250_v1  ;;  %247 = vst.msk [vmem:[#allocation3 + $0x8] sm:$0xff] (%p237_p4), %vm243_vm0, %v1250_v1 }
  0x18 PF: > { %v250_v2 = vld [vmem:[%s1417_s3] sm:$0xff]  ;;  %vm251_vm1 = vcmask 64512   ;;  %v249_v4 = vld [vmem:[%s1416_s2 + $0x8] sm:$0xff]  ;;  %v333_v5 = vlaneseq  ;;  %v1251_v6 = vmov 0.0|0.0   ;;  %vm1252_vm2 = vmmov 0   ;;  %s1255_s9 = smov 127  }
  0x19   : > { %v248_v3 = vld [vmem:[%s1416_s2] sm:$0xff]  ;;  %1084 = vmatprep.subr.mxu0 %v250_v2  ;;  %1124 = vmatprep.subr.bf16.mxu1 %v1251_v6  ;;  %v1253_v10 = vmov 0.0   ;;  %v1254_v16 = vmov 1.0|1.0   ;;  %vm398_vm9 = vcmask 130048   ;;  %s577_s10 = sld [smem:[#allocation4]] }
  0x1a   : > { %1086 = vmatprep.mubr.msk.f32.mxu0 %vm251_vm1, %v248_v3  ;;  %1085 = vmatpush3.msra.mxu0 %v250_v2  ;;  %v1038_v7 = vld [vmem:[%s1414_s0] ss:$0 sm:$0xff]  ;;  %v1335_v9 = vshrl.u32 %v333_v5, 7  ;;  %p1050_p5 = scmp.ne.s32.totalorder %s1239_s20, 0 }
  0x1b   : > { %1087 = vmatmul.mubr.msk.f32.vlgmr.msra.gmra.mrb[0].mxu0 %vm251_vm1, %v249_v4  ;;  %1127 = vmatprep.subr.bf16.mxu0 %v1251_v6  ;;  %v1041_v8 = vld [vmem:[%s1415_s1] ss:$0 sm:$0xff]  ;;  %v1256_v33 = vmov (!%p1050_p5), 0.0|0.0   ;;  %vm1257_vm12 = vmmov (!%p1050_p5), 0   ;;  %v1258_v34 = vmov (!%p1050_p5), 0.0   ;;  %vm729_vm13 = vcmask (!%p1050_p5), 7168  }
  0x1c   : > { %1100 = vmatprep.mubr.msk.f32.mxu0 %vm1252_vm2, %v1253_v10  ;;  %1093 = vmatprep.mubr.msk.f32.mxu1 %vm1252_vm2, %v1253_v10  ;;  %v335_v11 = vadd.s32 8, %v1335_v9  ;;  %vm341_vm3 = vcmp.eq.s32.totalorder %v1335_v9, %v1038_v7  ;;  %vm352_vm4 = vcmp.eq.s32.totalorder %v1335_v9, %v1041_v8  ;;  %v587_v29 = vsub.s32 (!%p1050_p5), 0, %v1335_v9  ;;  %v591_v36 = vld [vmem:[#allocation2] sm:$0xff] (!%p1050_p5)  ;;  %v592_v39 = vld [vmem:[#allocation2 + $0x8] sm:$0xff] (!%p1050_p5)  ;;  %v724_v57 = vld [vmem:[#allocation3 + $0x8] sm:$0xff] (!%p1050_p5) }
  0x1d   : > { %v1340_v12 = vsel %vm352_vm4, 1.0, %v1253_v10  ;;  %v1259_v35 = vmov (!%p1050_p5), 1.0|1.0   ;;  %v723_v58 = vld [vmem:[#allocation3] sm:$0xff] (!%p1050_p5) }
  0x1e   : > { %vm342_vm5 = vcmp.eq.s32.totalorder %v335_v11, %v1038_v7  ;;  %vm353_vm6 = vcmp.eq.s32.totalorder %v335_v11, %v1041_v8  ;;  %vm583_vm10 = vcmp.gt.f32.partialorder (!%p1050_p5), %v1340_v12, 0.5 }
  0x1f   : > { %vm1128_vm7 = vmpackc.low %vm342_vm5, %vm341_vm3  ;;  %v1342_v14 = vsel %vm353_vm6, 1.0, %v1253_v10  ;;  %v578_v25 = vstv %s577_s10 }
  0x20   : > { %1129 = vmatpush3.bf16.msk.msra.mxu0 %vm1128_vm7, %v1254_v16  ;;  %vm1344_vm8 = vmpackc.low %vm353_vm6, %vm352_vm4  ;;  %vm584_vm11 = vcmp.gt.f32.partialorder (!%p1050_p5), %v1342_v14, 0.5 }
  0x21   : > { %1126 = vmatpush3.bf16.msk.msra.mxu1 %vm1344_vm8, %v1254_v16  ;;  %1130 = vmatprep.subr.bf16.mxu0 (!%p1050_p5), %v1256_v33 }
  0xee   : > { %v1088_v13 = vpop.f32.mrb[0].mxu0 }
  0xef   : > { %v324_v15 = vpop.f32.mrb[1].mxu0 }
  0xf0   : > { %360 = vrot.lane.b32.xlu0 %v324_v15, %s1255_s9 }
  0xf4   : > { %362 = vrot.lane.b32.xlu0 %v1088_v13, %s1255_s9 }
 0x112   : > { %472 = vxpose.xlu0.b32.start [1/2] (short) (narrow) %v324_v15, 8 }
 0x116   : > { %473 = vxpose.xlu0.b32.end [2/2] (short) (narrow) %v1088_v13, 8 }
 0x162   : > { %v361_v18 = vpop.permute.xlu0 %360 }
 0x163   : > { %366 = vxpose.xlu1.b32.start [1/2] (short) (narrow) %v361_v18, 8 }
 0x166   : > { %v363_v19 = vpop.permute.xlu0 %362 }
 0x167   : > { %367 = vxpose.xlu1.b32.end [2/2] (short) (narrow) %v363_v19, 8 }
 0x192   : > { %v488_v20 = vpop.trf.xlu0 }
 0x193   : > { %1101 = vmatmul.mubr.msk.f32.vlgmr.msra.gmra.mrb[2].mxu0 %vm398_vm9, %v488_v20 }
 0x194   : > { %1107 = vmatprep.mubr.msk.f32.mxu0 (!%p1050_p5), %vm1257_vm12, %v1258_v34  ;;  %1132 = vmatpush3.bf16.msk.msra.mxu0 (!%p1050_p5), %vm1344_vm8, %v1259_v35 }
 0x1e3   : > { %v382_v21 = vpop.trf.xlu1 }
 0x1e4   : > { %1094 = vmatmul.mubr.msk.f32.vlgmr.msra.gmra.mrb[0].mxu1 %vm398_vm9, %v382_v21 }
 0x266   : > { %v573_v22 = vpop.f32.mrb[2].mxu0 }
 0x267   : > { %v1102_v23 = vpop.f32.mrb[3].mxu0 }
 0x2b4   : > { %582 = sbr.rel (%p1050_p5) target bundleno = 1352 (0x548), region = 48 }
 0x2b7   : > { %v468_v24 = vpop.f32.mrb[0].mxu1 }
 0x2b8   : > { %v574_v26 = vadd.f32 %v573_v22, %v468_v24  ;;  %v1095_v27 = vpop.f32.mrb[1].mxu1 }
 0x2ba   : > { %v1352_v28 = vadd.f32 %v578_v25, %v574_v26 }
 0x2bc   : > { %v588_v30 = vrot.slane %v1352_v28, %v587_v29 }
 0x2be   : > { %v589_v31 = vsel %vm583_vm10, %v588_v30, -1e+30  ;;  %v590_v32 = vsel %vm584_vm11, %v588_v30, -1e+30 }
 0x2bf   : > { %593 = vmax.xlane.f32.xlu0 %v589_v31 }
 0x2c3   : > { %595 = vmax.xlane.f32.xlu0 %v590_v32 }
 0x34c   : > { %v594_v37 = vpop.xlane.xlu0 %593 }
 0x34d   : > { %v597_v38 = vmax.f32 %v591_v36, %v594_v37 }
 0x34f   : > { %v717_v40 = vsub.f32 %v591_v36, %v597_v38  ;;  %732 = vst.msk [vmem:[#allocation2] sm:$0xff] %vm729_vm13, %v597_v38  ;;  %599 = vxpose.xlu1.b32.start [1/2] (short) (narrow) %v597_v38, 8 }
 0x350   : > { %v596_v41 = vpop.xlane.xlu0 %595 }
 0x351   : > { %v598_v42 = vmax.f32 %v592_v39, %v596_v41  ;;  %v719_v53 = vmul.f32 1.442695, %v717_v40 }
 0x353   : > { %v718_v43 = vsub.f32 %v592_v39, %v598_v42  ;;  %733 = vst.msk [vmem:[#allocation2 + $0x8] sm:$0xff] %vm729_vm13, %v598_v42  ;;  %600 = vxpose.xlu1.b32.end [2/2] (short) (narrow) %v598_v42, 8 }
 0x355   : > { %v721_v54 = vmul.f32 1.442695, %v718_v43 }
 0x3cf   : > { %v615_v44 = vpop.trf.xlu1 }
 0x3d0   : > { %1108 = vmatmul.mubr.msk.f32.vlgmr.msra.gmra.mrb[0].mxu0 %vm398_vm9, %v615_v44 }
 0x4a3   : > { %v700_v45 = vpop.f32.mrb[0].mxu0 }
 0x4a4   : > { %v704_v46 = vsub.f32 %v1352_v28, %v700_v45  ;;  %v1109_v47 = vpop.f32.mrb[1].mxu0 }
 0x4a6   : > { %v705_v48 = vmul.f32 1.442695, %v704_v46 }
 0x4a8   : > { %1185 = vpow2.f32 %v705_v48 }
 0x4a9   : > { %1187 = vpow2.f32 %v719_v53 }
 0x4aa   : > { %1189 = vpow2.f32 %v721_v54 }
 0x4b2   : > { %v1186_v49 = vpop.eup %1185 }
 0x4b3   : > { %v710_v50 = vrot.slane %v1186_v49, %v587_v29  ;;  %v1188_v55 = vpop.eup %1187 }
 0x4b4   : > { %v1190_v56 = vpop.eup %1189  ;;  %v725_v60 = vmul.f32 %v1188_v55, %v723_v58 }
 0x4b5   : > { %v712_v51 = vmul.f32 %v1342_v14, %v710_v50  ;;  %v711_v52 = vmul.f32 %v1340_v12, %v710_v50  ;;  %v726_v59 = vmul.f32 %v1190_v56, %v724_v57 }
 0x4b7   : > { %715 = vadd.xlane.f32.xlu1 %v712_v51  ;;  %713 = vadd.xlane.f32.xlu0 %v711_v52 }
 0x544   : > { %v716_v61 = vpop.xlane.xlu1 %715  ;;  %v714_v62 = vpop.xlane.xlu0 %713 }
 0x545   : > { %v728_v63 = vadd.f32 %v726_v59, %v716_v61  ;;  %v727_v0 = vadd.f32 %v725_v60, %v714_v62 }
 0x547   : > { %731 = vst.msk [vmem:[#allocation3 + $0x8] sm:$0xff] %vm729_vm13, %v728_v63  ;;  %730 = vst.msk [vmem:[#allocation3] sm:$0xff] %vm729_vm13, %v727_v0 }
 0x548 PF: > { %p1054_p6 = scmp.ne.s32.totalorder %s1239_s20, 1 }
 0x549   : > { %v738_v1 = vld [vmem:[#allocation2] sm:$0xff] (!%p1054_p6)  ;;  %v739_v3 = vld [vmem:[#allocation2 + $0x8] sm:$0xff] (!%p1054_p6)  ;;  %v1260_v5 = vmov (!%p1054_p6), 0.0|0.0   ;;  %v1261_v6 = vmov (!%p1054_p6), 1.0|1.0   ;;  %vm1262_vm14 = vmmov (!%p1054_p6), 0  }
 0x54a   : > { %737 = sbr.rel (%p1054_p6) target bundleno = 1719 (0x6b7), region = 52  ;;  %740 = vxpose.xlu0.b32.start [1/2] (short) (narrow) (!%p1054_p6), %v738_v1, 8  ;;  %1133 = vmatprep.subr.bf16.mxu0 (!%p1054_p6), %v1260_v5  ;;  %v1263_v7 = vmov (!%p1054_p6), 0.0  }
 0x54b   : > { %1136 = vmatprep.subr.bf16.mxu1 (!%p1054_p6), %v1260_v5  ;;  %1135 = vmatpush3.bf16.msk.msra.mxu0 (!%p1054_p6), %vm1344_vm8, %v1261_v6 }
 0x54c   : > { %1138 = vmatpush3.bf16.msk.msra.mxu1 (!%p1054_p6), %vm1344_vm8, %v1261_v6  ;;  %1114 = vmatprep.mubr.msk.f32.mxu0 (!%p1054_p6), %vm1262_vm14, %v1263_v7 }
 0x54d   : > { %1121 = vmatprep.mubr.msk.f32.mxu1 (!%p1054_p6), %vm1262_vm14, %v1263_v7 }
 0x54e   : > { %v845_v2 = vld [vmem:[#allocation3] sm:$0xff] (!%p1054_p6)  ;;  %v846_v4 = vld [vmem:[#allocation3 + $0x8] sm:$0xff] (!%p1054_p6)  ;;  %741 = vxpose.xlu0.b32.end [2/2] (short) (narrow) (!%p1054_p6), %v739_v3, 8 }
 0x54f   : > { %850 = vxpose.xlu1.b32.start [1/2] (short) (narrow) (!%p1054_p6), %v845_v2, 8 }
 0x553   : > { %851 = vxpose.xlu1.b32.end [2/2] (short) (narrow) %v846_v4, 8 }
 0x5ca   : > { %v756_v8 = vpop.trf.xlu0 }
 0x5cb   : > { %1115 = vmatmul.mubr.msk.f32.vlgmr.msra.gmra.mrb[0].mxu0 %vm398_vm9, %v756_v8 }
 0x5cf   : > { %v866_v9 = vpop.trf.xlu1 }
 0x5d0   : > { %1122 = vmatmul.mubr.msk.f32.vlgmr.msra.gmra.mrb[0].mxu1 %vm398_vm9, %v866_v9 }
 0x69e   : > { %v841_v10 = vpop.f32.mrb[0].mxu0 }
 0x69f   : > { %v847_v12 = vsub.f32 %v1352_v28, %v841_v10  ;;  %v1116_v13 = vpop.f32.mrb[1].mxu0 }
 0x6a1   : > { %v848_v16 = vmul.f32 1.442695, %v847_v12 }
 0x6a3   : > { %v951_v11 = vpop.f32.mrb[0].mxu1 }
 0x6a4   : > { %v952_v14 = vadd.f32 1e-16, %v951_v11  ;;  %v1123_v15 = vpop.f32.mrb[1].mxu1 }
 0x6a6   : > { %1191 = vrcp.f32 %v952_v14 }
 0x6a7   : > { %1193 = vpow2.f32 %v848_v16 }
 0x6b0   : > { %v1192_v17 = vpop.eup %1191 }
 0x6b1   : > { %v1194_v18 = vpop.eup %1193 }
 0x6b2   : > { %v956_v19 = vmul.f32 %v1194_v18, %v1192_v17 }
 0x6b4   : > { %v957_v20 = vadd.f32 0.5, %v956_v19 }
 0x6b6   : > { %958 = vst [vmem:[#allocation5] sm:$0x1] %v957_v20 }
 0x6b7 PF: > { %p1379_p7 = scmp.eq.s32.totalorder %s1030_s4, 1  ;;  %s1264_s12 = smov [#allocation5]  }
 0x6b8   : > { %s968_s13 = sshll.u32 %s1264_s12, 4  ;;  %s969_s13 = int_to_ptr.vmem [resolvable:$true] %s968_s13 }
 0x6b9   : > { %s1195_s14 = scalar_lea.vmem %s969_s13, 16  ;;  %s1201_s15 = scalar_lea.vmem %s969_s13, 32 }
 0x6ba   : > { %p1196_p8 = scmp.ne.s32.totalorder %s969_s13, %s1195_s14  ;;  %p1202_p11 = scmp.lt.s32.totalorder %s969_s13, %s969_s13 }
 0x6bb   : > { %p1203_p12 = scmp.lt.s32.totalorder %s1201_s15, %s1195_s14 }
 0x6bc   : > { %p1197_p9 = pnand %p1196_p8, %p1379_p7 }
 0x6bd   : > { %p1204_p13 = por %p1203_p12, %p1202_p11 }
 0x6be   : > { %p1198_p10 = pneg %p1197_p9 }
 0x6c0   : > { %p1205_p0 = pnand %p1204_p13, %p1198_p10 }
 0x6c2   : > { %1208 = shalt.err (!%p1205_p0)
}
 0x6c3   : > { %s1209_s18 = scalar_lea.hbm %s1419_s5, 16 }
 0x6c4   : > { %p1210_p1 = scmp.ne.s32.totalorder %s1419_s5, %s1209_s18  ;;  %p1215_p4 = scmp.lt.u32.totalorder %s1209_s18, %s1419_s5 }
 0x6c6   : > { %p1211_p2 = pnand %p1210_p1, %p1379_p7 }
 0x6c8   : > { %p1212_p3 = pneg %p1211_p2 }
 0x6ca   : > { %p1217_p5 = pnand %p1215_p4, %p1212_p3 }
 0x6cc   : > { %1220 = shalt.err (!%p1217_p5)
}
 0x6cd   : > { %1140 = dma.vmem_to_hbm [thread:$0]  (%p1379_p7), %s969_s13, 16, %s1419_s5, [#allocation6]  }
 0x6ce   : > { %1234 = dma.done.wait (%p1379_p7), [#allocation6], 16  }
 0x6cf   : > { %1236 = vsyncadd (%p1379_p7), [#allocation6], 4294967280 }
 0x6d0 PF: > { %s17_s22 = sadd.s32 1, %s1247_s22   ;;  %s1423_s20 = smov %s1243_s21 }
 0x6d1   : > { %p14_p6 = scmp.ge.s32.totalorder %s17_s22, 4   ;;  %s1424_s21 = smov %s1426_s23 }
 0x6d3   :  { %16 = sbr.rel (!%p14_p6) target bundleno = 4 (0x4), region = 83 }
 0x6da   :  { %981 = vsyncpa [#allocation6], 1 }
 0x6db   :  { %983 = vsyncpa [#allocation6 + $0x1], 1 }

</bundles_post_ra>
